<compile_context>
chip_gen: v7x
topology: tpu7x:2x2x1
jax: 0.10.0
libtpu: 0.0.40
codegen_flags: <defaults>
</compile_context>

<pallas_src>
import jax
import jax.numpy as jnp
from jax.experimental import pallas as pl
from jax.experimental.pallas import tpu as pltpu


# ----------------------------- Pallas kernels -------------------------------

def _conv_bias_relu_pool_kernel(w_ref, b_ref, p_ref, o_ref):
    """Fused conv (im2col matmul) + bias + ReLU + 2x2 max-pool.

    w_ref: (Cout, K)   bf16,  K = Cin*k*k (PyTorch (Cin, kh, kw) flatten order)
    b_ref: (Cout, 1)   f32
    p_ref: (4, K, TM)  bf16,  quadrant-grouped patches: quadrant q = i*2+j
                              is the patch of conv-output pixel (2*ph+i, 2*pw+j)
    o_ref: (Cout, TM)  f32,   pooled output (lane-dense: TM = tile of N*PH*PW)
    """
    w = w_ref[...]
    y = jnp.dot(w, p_ref[0], preferred_element_type=jnp.float32)
    for q in range(1, 4):
        y = jnp.maximum(
            y, jnp.dot(w, p_ref[q], preferred_element_type=jnp.float32))
    # pool(relu(conv + b)) == relu(max_q(conv_q) + b)  (ReLU monotone, shared b)
    o_ref[...] = jnp.maximum(y + b_ref[...], 0.0)


def _fc_fused_kernel(x_ref, w1_ref, b1_ref, w2_ref, b2_ref, o_ref):
    """Fused fc1 + ReLU + (dropout=identity) + fc2."""
    h = jnp.dot(x_ref[...], w1_ref[...], preferred_element_type=jnp.float32)
    h = jnp.maximum(h + b1_ref[...], 0.0)
    # TODO(synk): Dropout(p=0.5) is stochastic in training mode; implemented as
    # identity (eval-mode semantics).
    o = jnp.dot(h.astype(jnp.bfloat16), w2_ref[...],
                preferred_element_type=jnp.float32)
    o_ref[...] = o + b2_ref[...]


# ----------------------------- wrappers --------------------------------------

_TM_MAX = 512  # lane-tile cap: keeps double-buffered blocks small (v7x 64 MiB)


def _conv_pool_pallas(w, b, p):
    """w:(Cout,K) bf16, b:(Cout,1) f32, p:(4,K,Mq) bf16 -> (Cout,Mq) f32."""
    Cout, K = w.shape
    Mq = p.shape[2]
    tm = Mq if Mq <= _TM_MAX else _TM_MAX
    grid = (pl.cdiv(Mq, tm),)
    return pl.pallas_call(
        _conv_bias_relu_pool_kernel,
        out_shape=jax.ShapeDtypeStruct((Cout, Mq), jnp.float32),
        grid=grid,
        in_specs=[
            pl.BlockSpec((Cout, K), lambda t: (0, 0)),
            pl.BlockSpec((Cout, 1), lambda t: (0, 0)),
            pl.BlockSpec((4, K, tm), lambda t: (0, 0, t)),
        ],
        out_specs=pl.BlockSpec((Cout, tm), lambda t: (0, t)),
        compiler_params=pltpu.CompilerParams(
            dimension_semantics=("parallel",)),
    )(w, b, p)


def _fc_pallas(x, w1, b1, w2, b2):
    """x:(N,K) bf16 -> relu(x@w1+b1) @ w2 + b2 :: (N,O) f32, one kernel."""
    N, K = x.shape
    H = w1.shape[1]
    O = w2.shape[1]
    return pl.pallas_call(
        _fc_fused_kernel,
        out_shape=jax.ShapeDtypeStruct((N, O), jnp.float32),
        grid=(1,),
        in_specs=[
            pl.BlockSpec((N, K), lambda i: (0, 0)),
            pl.BlockSpec((K, H), lambda i: (0, 0)),
            pl.BlockSpec((1, H), lambda i: (0, 0)),
            pl.BlockSpec((H, O), lambda i: (0, 0)),
            pl.BlockSpec((1, O), lambda i: (0, 0)),
        ],
        out_specs=pl.BlockSpec((N, O), lambda i: (0, 0)),
    )(x, w1, b1, w2, b2)


def _pooled_conv_patches(a_cnhw, k):
    """a:(C,N,H,W) -> (4, C*k*k, N*PH*PW) bf16 quadrant-grouped im2col patches.

    K-axis order is (c, kh, kw), matching PyTorch conv weight
    .reshape(Cout, C*k*k).  Quadrant q = i*2+j holds the patch of conv-output
    pixel (2*ph+i, 2*pw+j), so the 2x2 max-pool becomes an elementwise max
    over q inside the conv kernel.
    """
    C, N, H, W = a_cnhw.shape
    OH, OW = H - k + 1, W - k + 1
    PH, PW = OH // 2, OW // 2
    cols = [a_cnhw[:, :, di:di + OH, dj:dj + OW]
            for di in range(k) for dj in range(k)]
    p = jnp.stack(cols, axis=0).reshape(k, k, C, N, OH, OW)
    p = p[..., :2 * PH, :2 * PW].reshape(k, k, C, N, PH, 2, PW, 2)
    p = p.transpose(5, 7, 2, 0, 1, 3, 4, 6)   # (i, j, C, kh, kw, N, PH, PW)
    return p.reshape(4, C * k * k, N * PH * PW).astype(jnp.bfloat16)


# ----------------------------- parameters ------------------------------------

def init_params(key):
    """PyTorch-layout parameters, uniform(+-1/sqrt(fan_in)) like nn.Conv2d/Linear."""
    ks = jax.random.split(key, 8)

    def u(k, shape, fan_in):
        bound = 1.0 / jnp.sqrt(fan_in)
        return jax.random.uniform(k, shape, jnp.float32, -bound, bound)

    return {
        "conv1_w": u(ks[0], (6, 3, 5, 5), 3 * 5 * 5),
        "conv1_b": u(ks[1], (6,), 3 * 5 * 5),
        "conv2_w": u(ks[2], (16, 6, 5, 5), 6 * 5 * 5),
        "conv2_b": u(ks[3], (16,), 6 * 5 * 5),
        "fc1_w":   u(ks[4], (256, 16 * 5 * 5), 16 * 5 * 5),
        "fc1_b":   u(ks[5], (256,), 16 * 5 * 5),
        "fc2_w":   u(ks[6], (10, 256), 256),
        "fc2_b":   u(ks[7], (10,), 256),
    }


def prepare_params(params):
    """One-time conversion from PyTorch layout to kernel layout
    (bf16 matmul weights, f32 biases, matmul-ready orientation)."""
    return {
        "w1": params["conv1_w"].reshape(6, -1).astype(jnp.bfloat16),    # (6, 75)
        "b1": params["conv1_b"].reshape(6, 1).astype(jnp.float32),
        "w2": params["conv2_w"].reshape(16, -1).astype(jnp.bfloat16),   # (16, 150)
        "b2": params["conv2_b"].reshape(16, 1).astype(jnp.float32),
        "fc1_w": params["fc1_w"].T.astype(jnp.bfloat16),                # (400, 256)
        "fc1_b": params["fc1_b"].reshape(1, -1).astype(jnp.float32),
        "fc2_w": params["fc2_w"].T.astype(jnp.bfloat16),                # (256, 10)
        "fc2_b": params["fc2_b"].reshape(1, -1).astype(jnp.float32),
    }


# ----------------------------- the network -----------------------------------

def net_forward(x, kp):
    """x: (N, 3, 32, 32) float32 -> (N, 10) float32."""
    N = x.shape[0]

    # Layer 1: conv(3->6, k=5) + ReLU + maxpool(2,2)   :: 32 -> 28 -> 14
    x_cn = jnp.transpose(x, (1, 0, 2, 3))               # (3, N, 32, 32), once
    p1 = _pooled_conv_patches(x_cn, 5)                  # (4, 75, N*14*14)
    a1 = _conv_pool_pallas(kp["w1"], kp["b1"], p1)      # (6, N*14*14) f32

    # Layer 2: conv(6->16, k=5) + ReLU + maxpool(2,2)  :: 14 -> 10 -> 5
    a1 = a1.reshape(6, N, 14, 14)                       # already (C, N, H, W)
    p2 = _pooled_conv_patches(a1, 5)                    # (4, 150, N*5*5)
    a2 = _conv_pool_pallas(kp["w2"], kp["b2"], p2)      # (16, N*5*5) f32

    # Flatten channel-major per sample (matches torch .view(-1, 16*5*5))
    flat = a2.reshape(16, N, 25).transpose(1, 0, 2).reshape(N, 400)
    flat = flat.astype(jnp.bfloat16)

    # fc1 + ReLU (+ dropout identity) + fc2, one fused kernel
    return _fc_pallas(flat, kp["fc1_w"], kp["fc1_b"], kp["fc2_w"], kp["fc2_b"])


if __name__ == "__main__":
    key = jax.random.PRNGKey(0)
    pkey, xkey = jax.random.split(key)
    params = init_params(pkey)
    kparams = prepare_params(params)          # weight layout conversion: once
    # Forward implies 32x32 RGB (CIFAR-sized) input; batch = 2.
    x = jax.random.normal(xkey, (2, 3, 32, 32), dtype=jnp.float32)
    fwd = jax.jit(net_forward)
    y = jax.block_until_ready(fwd(x, kparams))
    assert y.shape == (2, 10) and y.dtype == jnp.float32
    print("KERNEL_OK")
</pallas_src>

<mosaic_0001>
module attributes {stable_mosaic.version = 11 : i64} {
  func.func @_conv_bias_relu_pool_kernel(%arg0: i32, %arg1: memref<6x75xbf16, #tpu.memory_space<vmem>>, %arg2: memref<6x1xf32, #tpu.memory_space<vmem>>, %arg3: memref<4x75x392xbf16, #tpu.memory_space<vmem>>, %arg4: memref<6x392xf32, #tpu.memory_space<vmem>>) attributes {dimension_semantics = [#tpu.dimension_semantics<parallel>], iteration_bounds = array<i64: 1>, scalar_prefetch = 0 : i64, scratch_operands = 0 : i64, tpu.core_type = #tpu.core_type<tc>, window_params = [{pipeline_mode = #tpu.pipeline_mode<synchronous>, transform_indices = @transform_0, window_bounds = array<i64: 6, 75>}, {pipeline_mode = #tpu.pipeline_mode<synchronous>, transform_indices = @transform_1, window_bounds = array<i64: 6, 1>}, {transform_indices = @transform_2, window_bounds = array<i64: 4, 75, 392>}, {transform_indices = @transform_3, window_bounds = array<i64: 6, 392>}]} {
    %c0 = arith.constant 0 : index
    %c0_0 = arith.constant 0 : index
    %0 = vector.load %arg1[%c0, %c0_0] : memref<6x75xbf16, #tpu.memory_space<vmem>>, vector<6x75xbf16>
    %c0_1 = arith.constant 0 : index
    %c0_2 = arith.constant 0 : index
    %c0_3 = arith.constant 0 : index
    %1 = vector.load %arg3[%c0_1, %c0_2, %c0_3] : memref<4x75x392xbf16, #tpu.memory_space<vmem>>, vector<1x75x392xbf16>
    %2 = vector.shape_cast %1 : vector<1x75x392xbf16> to vector<75x392xbf16>
    %cst = arith.constant dense<0.000000e+00> : vector<6x392xf32>
    %3 = tpu.matmul %0, %2, %cst {dimension_numbers = #tpu.dot_dimension_numbers<[1], [0], [0], [1], [0, 0, 1, 1], [], []>} : vector<6x75xbf16>, vector<75x392xbf16>, vector<6x392xf32> -> vector<6x392xf32>
    %c1 = arith.constant 1 : index
    %c0_4 = arith.constant 0 : index
    %c0_5 = arith.constant 0 : index
    %4 = vector.load %arg3[%c1, %c0_4, %c0_5] : memref<4x75x392xbf16, #tpu.memory_space<vmem>>, vector<1x75x392xbf16>
    %5 = vector.shape_cast %4 : vector<1x75x392xbf16> to vector<75x392xbf16>
    %cst_6 = arith.constant dense<0.000000e+00> : vector<6x392xf32>
    %6 = tpu.matmul %0, %5, %cst_6 {dimension_numbers = #tpu.dot_dimension_numbers<[1], [0], [0], [1], [0, 0, 1, 1], [], []>} : vector<6x75xbf16>, vector<75x392xbf16>, vector<6x392xf32> -> vector<6x392xf32>
    %7 = arith.maximumf %3, %6 : vector<6x392xf32>
    %c2 = arith.constant 2 : index
    %c0_7 = arith.constant 0 : index
    %c0_8 = arith.constant 0 : index
    %8 = vector.load %arg3[%c2, %c0_7, %c0_8] : memref<4x75x392xbf16, #tpu.memory_space<vmem>>, vector<1x75x392xbf16>
    %9 = vector.shape_cast %8 : vector<1x75x392xbf16> to vector<75x392xbf16>
    %cst_9 = arith.constant dense<0.000000e+00> : vector<6x392xf32>
    %10 = tpu.matmul %0, %9, %cst_9 {dimension_numbers = #tpu.dot_dimension_numbers<[1], [0], [0], [1], [0, 0, 1, 1], [], []>} : vector<6x75xbf16>, vector<75x392xbf16>, vector<6x392xf32> -> vector<6x392xf32>
    %11 = arith.maximumf %7, %10 : vector<6x392xf32>
    %c3 = arith.constant 3 : index
    %c0_10 = arith.constant 0 : index
    %c0_11 = arith.constant 0 : index
    %12 = vector.load %arg3[%c3, %c0_10, %c0_11] : memref<4x75x392xbf16, #tpu.memory_space<vmem>>, vector<1x75x392xbf16>
    %13 = vector.shape_cast %12 : vector<1x75x392xbf16> to vector<75x392xbf16>
    %cst_12 = arith.constant dense<0.000000e+00> : vector<6x392xf32>
    %14 = tpu.matmul %0, %13, %cst_12 {dimension_numbers = #tpu.dot_dimension_numbers<[1], [0], [0], [1], [0, 0, 1, 1], [], []>} : vector<6x75xbf16>, vector<75x392xbf16>, vector<6x392xf32> -> vector<6x392xf32>
    %15 = arith.maximumf %11, %14 : vector<6x392xf32>
    %c0_13 = arith.constant 0 : index
    %c0_14 = arith.constant 0 : index
    %16 = vector.load %arg2[%c0_13, %c0_14] : memref<6x1xf32, #tpu.memory_space<vmem>>, vector<6x1xf32>
    %17 = vector.broadcast %16 : vector<6x1xf32> to vector<6x392xf32>
    %18 = arith.addf %15, %17 : vector<6x392xf32>
    %cst_15 = arith.constant 0.000000e+00 : f32
    %19 = vector.broadcast %cst_15 : f32 to vector<6x392xf32>
    %20 = arith.maximumf %18, %19 : vector<6x392xf32>
    %c0_16 = arith.constant 0 : index
    %c0_17 = arith.constant 0 : index
    %21 = vector.load %arg4[%c0_16, %c0_17] : memref<6x392xf32, #tpu.memory_space<vmem>>, vector<6x392xf32>
    tpu.vector_store %arg4[%c0_16, %c0_17], %20 {strides = array<i32>} : memref<6x392xf32, #tpu.memory_space<vmem>>, vector<6x392xf32>,
    return
  }
  func.func @transform_0(%arg0: i32) -> (i32, i32) {
    %c0_i32 = arith.constant 0 : i32
    %c0_i32_0 = arith.constant 0 : i32
    %c0_i32_1 = arith.constant 0 : i32
    return %c0_i32, %c0_i32_0 : i32, i32
  }
  func.func @transform_1(%arg0: i32) -> (i32, i32) {
    %c0_i32 = arith.constant 0 : i32
    %c0_i32_0 = arith.constant 0 : i32
    %c0_i32_1 = arith.constant 0 : i32
    return %c0_i32, %c0_i32_0 : i32, i32
  }
  func.func @transform_2(%arg0: i32) -> (i32, i32, i32) {
    %c0_i32 = arith.constant 0 : i32
    %c0_i32_0 = arith.constant 0 : i32
    %c0_i32_1 = arith.constant 0 : i32
    return %c0_i32, %c0_i32_0, %arg0 : i32, i32, i32
  }
  func.func @transform_3(%arg0: i32) -> (i32, i32) {
    %c0_i32 = arith.constant 0 : i32
    %c0_i32_0 = arith.constant 0 : i32
    return %c0_i32, %arg0 : i32, i32
  }
}

module attributes {stable_mosaic.version = 11 : i64} {
  func.func @_conv_bias_relu_pool_kernel(%arg0: i32, %arg1: memref<16x150xbf16, #tpu.memory_space<vmem>>, %arg2: memref<16x1xf32, #tpu.memory_space<vmem>>, %arg3: memref<4x150x50xbf16, #tpu.memory_space<vmem>>, %arg4: memref<16x50xf32, #tpu.memory_space<vmem>>) attributes {dimension_semantics = [#tpu.dimension_semantics<parallel>], iteration_bounds = array<i64: 1>, scalar_prefetch = 0 : i64, scratch_operands = 0 : i64, tpu.core_type = #tpu.core_type<tc>, window_params = [{pipeline_mode = #tpu.pipeline_mode<synchronous>, transform_indices = @transform_0, window_bounds = array<i64: 16, 150>}, {pipeline_mode = #tpu.pipeline_mode<synchronous>, transform_indices = @transform_1, window_bounds = array<i64: 16, 1>}, {transform_indices = @transform_2, window_bounds = array<i64: 4, 150, 50>}, {transform_indices = @transform_3, window_bounds = array<i64: 16, 50>}]} {
    %c0 = arith.constant 0 : index
    %c0_0 = arith.constant 0 : index
    %0 = vector.load %arg1[%c0, %c0_0] : memref<16x150xbf16, #tpu.memory_space<vmem>>, vector<16x150xbf16>
    %c0_1 = arith.constant 0 : index
    %c0_2 = arith.constant 0 : index
    %c0_3 = arith.constant 0 : index
    %1 = vector.load %arg3[%c0_1, %c0_2, %c0_3] : memref<4x150x50xbf16, #tpu.memory_space<vmem>>, vector<1x150x50xbf16>
    %2 = vector.shape_cast %1 : vector<1x150x50xbf16> to vector<150x50xbf16>
    %cst = arith.constant dense<0.000000e+00> : vector<16x50xf32>
    %3 = tpu.matmul %0, %2, %cst {dimension_numbers = #tpu.dot_dimension_numbers<[1], [0], [0], [1], [0, 0, 1, 1], [], []>} : vector<16x150xbf16>, vector<150x50xbf16>, vector<16x50xf32> -> vector<16x50xf32>
    %c1 = arith.constant 1 : index
    %c0_4 = arith.constant 0 : index
    %c0_5 = arith.constant 0 : index
    %4 = vector.load %arg3[%c1, %c0_4, %c0_5] : memref<4x150x50xbf16, #tpu.memory_space<vmem>>, vector<1x150x50xbf16>
    %5 = vector.shape_cast %4 : vector<1x150x50xbf16> to vector<150x50xbf16>
    %cst_6 = arith.constant dense<0.000000e+00> : vector<16x50xf32>
    %6 = tpu.matmul %0, %5, %cst_6 {dimension_numbers = #tpu.dot_dimension_numbers<[1], [0], [0], [1], [0, 0, 1, 1], [], []>} : vector<16x150xbf16>, vector<150x50xbf16>, vector<16x50xf32> -> vector<16x50xf32>
    %7 = arith.maximumf %3, %6 : vector<16x50xf32>
    %c2 = arith.constant 2 : index
    %c0_7 = arith.constant 0 : index
    %c0_8 = arith.constant 0 : index
    %8 = vector.load %arg3[%c2, %c0_7, %c0_8] : memref<4x150x50xbf16, #tpu.memory_space<vmem>>, vector<1x150x50xbf16>
    %9 = vector.shape_cast %8 : vector<1x150x50xbf16> to vector<150x50xbf16>
    %cst_9 = arith.constant dense<0.000000e+00> : vector<16x50xf32>
    %10 = tpu.matmul %0, %9, %cst_9 {dimension_numbers = #tpu.dot_dimension_numbers<[1], [0], [0], [1], [0, 0, 1, 1], [], []>} : vector<16x150xbf16>, vector<150x50xbf16>, vector<16x50xf32> -> vector<16x50xf32>
    %11 = arith.maximumf %7, %10 : vector<16x50xf32>
    %c3 = arith.constant 3 : index
    %c0_10 = arith.constant 0 : index
    %c0_11 = arith.constant 0 : index
    %12 = vector.load %arg3[%c3, %c0_10, %c0_11] : memref<4x150x50xbf16, #tpu.memory_space<vmem>>, vector<1x150x50xbf16>
    %13 = vector.shape_cast %12 : vector<1x150x50xbf16> to vector<150x50xbf16>
    %cst_12 = arith.constant dense<0.000000e+00> : vector<16x50xf32>
    %14 = tpu.matmul %0, %13, %cst_12 {dimension_numbers = #tpu.dot_dimension_numbers<[1], [0], [0], [1], [0, 0, 1, 1], [], []>} : vector<16x150xbf16>, vector<150x50xbf16>, vector<16x50xf32> -> vector<16x50xf32>
    %15 = arith.maximumf %11, %14 : vector<16x50xf32>
    %c0_13 = arith.constant 0 : index
    %c0_14 = arith.constant 0 : index
    %16 = vector.load %arg2[%c0_13, %c0_14] : memref<16x1xf32, #tpu.memory_space<vmem>>, vector<16x1xf32>
    %17 = vector.broadcast %16 : vector<16x1xf32> to vector<16x50xf32>
    %18 = arith.addf %15, %17 : vector<16x50xf32>
    %cst_15 = arith.constant 0.000000e+00 : f32
    %19 = vector.broadcast %cst_15 : f32 to vector<16x50xf32>
    %20 = arith.maximumf %18, %19 : vector<16x50xf32>
    %c0_16 = arith.constant 0 : index
    %c0_17 = arith.constant 0 : index
    %21 = vector.load %arg4[%c0_16, %c0_17] : memref<16x50xf32, #tpu.memory_space<vmem>>, vector<16x50xf32>
    tpu.vector_store %arg4[%c0_16, %c0_17], %20 {strides = array<i32>} : memref<16x50xf32, #tpu.memory_space<vmem>>, vector<16x50xf32>,
    return
  }
  func.func @transform_0(%arg0: i32) -> (i32, i32) {
    %c0_i32 = arith.constant 0 : i32
    %c0_i32_0 = arith.constant 0 : i32
    %c0_i32_1 = arith.constant 0 : i32
    return %c0_i32, %c0_i32_0 : i32, i32
  }
  func.func @transform_1(%arg0: i32) -> (i32, i32) {
    %c0_i32 = arith.constant 0 : i32
    %c0_i32_0 = arith.constant 0 : i32
    %c0_i32_1 = arith.constant 0 : i32
    return %c0_i32, %c0_i32_0 : i32, i32
  }
  func.func @transform_2(%arg0: i32) -> (i32, i32, i32) {
    %c0_i32 = arith.constant 0 : i32
    %c0_i32_0 = arith.constant 0 : i32
    %c0_i32_1 = arith.constant 0 : i32
    return %c0_i32, %c0_i32_0, %arg0 : i32, i32, i32
  }
  func.func @transform_3(%arg0: i32) -> (i32, i32) {
    %c0_i32 = arith.constant 0 : i32
    %c0_i32_0 = arith.constant 0 : i32
    return %c0_i32, %arg0 : i32, i32
  }
}

module attributes {stable_mosaic.version = 11 : i64} {
  func.func @_fc_fused_kernel(%arg0: i32, %arg1: memref<2x400xbf16, #tpu.memory_space<vmem>>, %arg2: memref<400x256xbf16, #tpu.memory_space<vmem>>, %arg3: memref<1x256xf32, #tpu.memory_space<vmem>>, %arg4: memref<256x10xbf16, #tpu.memory_space<vmem>>, %arg5: memref<1x10xf32, #tpu.memory_space<vmem>>, %arg6: memref<2x10xf32, #tpu.memory_space<vmem>>) attributes {dimension_semantics = [#tpu.dimension_semantics<arbitrary>], iteration_bounds = array<i64: 1>, scalar_prefetch = 0 : i64, scratch_operands = 0 : i64, tpu.core_type = #tpu.core_type<tc>, window_params = [{pipeline_mode = #tpu.pipeline_mode<synchronous>, transform_indices = @transform_0, window_bounds = array<i64: 2, 400>}, {pipeline_mode = #tpu.pipeline_mode<synchronous>, transform_indices = @transform_1, window_bounds = array<i64: 400, 256>}, {pipeline_mode = #tpu.pipeline_mode<synchronous>, transform_indices = @transform_2, window_bounds = array<i64: 1, 256>}, {pipeline_mode = #tpu.pipeline_mode<synchronous>, transform_indices = @transform_3, window_bounds = array<i64: 256, 10>}, {pipeline_mode = #tpu.pipeline_mode<synchronous>, transform_indices = @transform_4, window_bounds = array<i64: 1, 10>}, {pipeline_mode = #tpu.pipeline_mode<synchronous>, transform_indices = @transform_5, window_bounds = array<i64: 2, 10>}]} {
    %c0 = arith.constant 0 : index
    %c0_0 = arith.constant 0 : index
    %0 = vector.load %arg1[%c0, %c0_0] : memref<2x400xbf16, #tpu.memory_space<vmem>>, vector<2x400xbf16>
    %c0_1 = arith.constant 0 : index
    %c0_2 = arith.constant 0 : index
    %1 = vector.load %arg2[%c0_1, %c0_2] : memref<400x256xbf16, #tpu.memory_space<vmem>>, vector<400x256xbf16>
    %cst = arith.constant dense<0.000000e+00> : vector<2x256xf32>
    %2 = tpu.matmul %0, %1, %cst {dimension_numbers = #tpu.dot_dimension_numbers<[1], [0], [0], [1], [0, 0, 1, 1], [], []>} : vector<2x400xbf16>, vector<400x256xbf16>, vector<2x256xf32> -> vector<2x256xf32>
    %c0_3 = arith.constant 0 : index
    %c0_4 = arith.constant 0 : index
    %3 = vector.load %arg3[%c0_3, %c0_4] : memref<1x256xf32, #tpu.memory_space<vmem>>, vector<1x256xf32>
    %4 = vector.broadcast %3 : vector<1x256xf32> to vector<2x256xf32>
    %5 = arith.addf %2, %4 : vector<2x256xf32>
    %cst_5 = arith.constant 0.000000e+00 : f32
    %6 = vector.broadcast %cst_5 : f32 to vector<2x256xf32>
    %7 = arith.maximumf %5, %6 : vector<2x256xf32>
    %8 = arith.truncf %7 : vector<2x256xf32> to vector<2x256xbf16>
    %c0_6 = arith.constant 0 : index
    %c0_7 = arith.constant 0 : index
    %9 = vector.load %arg4[%c0_6, %c0_7] : memref<256x10xbf16, #tpu.memory_space<vmem>>, vector<256x10xbf16>
    %cst_8 = arith.constant dense<0.000000e+00> : vector<2x10xf32>
    %10 = tpu.matmul %8, %9, %cst_8 {dimension_numbers = #tpu.dot_dimension_numbers<[1], [0], [0], [1], [0, 0, 1, 1], [], []>} : vector<2x256xbf16>, vector<256x10xbf16>, vector<2x10xf32> -> vector<2x10xf32>
    %c0_9 = arith.constant 0 : index
    %c0_10 = arith.constant 0 : index
    %11 = vector.load %arg5[%c0_9, %c0_10] : memref<1x10xf32, #tpu.memory_space<vmem>>, vector<1x10xf32>
    %12 = vector.broadcast %11 : vector<1x10xf32> to vector<2x10xf32>
    %13 = arith.addf %10, %12 : vector<2x10xf32>
    %c0_11 = arith.constant 0 : index
    %c0_12 = arith.constant 0 : index
    %14 = vector.load %arg6[%c0_11, %c0_12] : memref<2x10xf32, #tpu.memory_space<vmem>>, vector<2x10xf32>
    tpu.vector_store %arg6[%c0_11, %c0_12], %13 {strides = array<i32>} : memref<2x10xf32, #tpu.memory_space<vmem>>, vector<2x10xf32>,
    return
  }
  func.func @transform_0(%arg0: i32) -> (i32, i32) {
    %c0_i32 = arith.constant 0 : i32
    %c0_i32_0 = arith.constant 0 : i32
    %c0_i32_1 = arith.constant 0 : i32
    return %c0_i32, %c0_i32_0 : i32, i32
  }
  func.func @transform_1(%arg0: i32) -> (i32, i32) {
    %c0_i32 = arith.constant 0 : i32
    %c0_i32_0 = arith.constant 0 : i32
    %c0_i32_1 = arith.constant 0 : i32
    return %c0_i32, %c0_i32_0 : i32, i32
  }
  func.func @transform_2(%arg0: i32) -> (i32, i32) {
    %c0_i32 = arith.constant 0 : i32
    %c0_i32_0 = arith.constant 0 : i32
    %c0_i32_1 = arith.constant 0 : i32
    return %c0_i32, %c0_i32_0 : i32, i32
  }
  func.func @transform_3(%arg0: i32) -> (i32, i32) {
    %c0_i32 = arith.constant 0 : i32
    %c0_i32_0 = arith.constant 0 : i32
    %c0_i32_1 = arith.constant 0 : i32
    return %c0_i32, %c0_i32_0 : i32, i32
  }
  func.func @transform_4(%arg0: i32) -> (i32, i32) {
    %c0_i32 = arith.constant 0 : i32
    %c0_i32_0 = arith.constant 0 : i32
    %c0_i32_1 = arith.constant 0 : i32
    return %c0_i32, %c0_i32_0 : i32, i32
  }
  func.func @transform_5(%arg0: i32) -> (i32, i32) {
    %c0_i32 = arith.constant 0 : i32
    %c0_i32_0 = arith.constant 0 : i32
    %c0_i32_1 = arith.constant 0 : i32
    return %c0_i32, %c0_i32_0 : i32, i32
  }
}

</mosaic_0001>

<bundles_post_ra>
// kernel: net_forward.3
= control target key start
LH: loop header
LB: loop body
LE: loop exit
PB: predicated region body
PF: predicated region fallthrough
CT: control target
= control target key end

     0   :  { %v1173_v1 = vmov 0   ;;  %vm136_vm0 = vcmask 1044480   ;;  %vm137_vm1 = vcmask 1045504   ;;  %v1174_v10 = vmov 65535   ;;  %s1498_s2 = inlined_call_operand.vmem [shape: bf16[4,75,392], index: 2, kind: input, shape index: {}]   ;;  %s1499_s0 = inlined_call_operand.vmem [shape: bf16[6,75], index: 0, kind: input, shape index: {}]   ;;  %s1500_s1 = inlined_call_operand.vmem [shape: f32[6,1], index: 1, kind: input, shape index: {}]   ;;  %s1501_s3 = inlined_call_operand.vmem [shape: f32[6,392], index: 3, kind: output, shape index: {}]  }
   0x1   :  { %v1053_v0 = vld [vmem:[%s1498_s2 + $0x4] ss:$16 sps:$4 sm:$0xff]   ;;  %184 = vmatprep.mubr.bf16.mxu0 %v1173_v1  ;;  %225 = vmatprep.mubr.bf16.mxu1 %v1173_v1  ;;  %v1055_v2 = vld [vmem:[%s1498_s2 + $0xc] ss:$16 sps:$4 sm:$0xff]   ;;  %v1057_v3 = vld [vmem:[%s1498_s2] ss:$16 sps:$4 sm:$0xff]  }
   0x2   :  { %1052 = vset.pattern.permute.xlu0 %v1173_v1  ;;  %152 = vmatprep.subr.bf16.mxu0 %v1053_v0  ;;  %v1058_v4 = vld [vmem:[%s1498_s2 + $0x8] ss:$16 sps:$4 sm:$0xff]   ;;  %v1059_v5 = vld [vmem:[%s1498_s2 + $0x24] ss:$16 sps:$4 sm:$0xff]   ;;  %v1061_v6 = vld [vmem:[%s1498_s2 + $0x2c] ss:$16 sps:$4 sm:$0xff]  }
   0x3   :  { %193 = vmatprep.subr.bf16.mxu1 %v1055_v2  ;;  %153 = vmatpush1.bf16.msra.mxu0 %v1057_v3  ;;  %v1063_v7 = vld [vmem:[%s1498_s2 + $0x20] ss:$16 sps:$4 sm:$0xff]   ;;  %v1064_v8 = vld [vmem:[%s1498_s2 + $0x28] ss:$16 sps:$4 sm:$0xff]   ;;  %v1065_v9 = vld [vmem:[%s1498_s2 + $0x44] ss:$16 sps:$4 sm:$0xff]  }
   0x4   :  { %194 = vmatpush1.bf16.msra.mxu1 %v1058_v4  ;;  %154 = vmatprep.subr.bf16.mxu0 %v1059_v5  ;;  %v138_v11 = vsel %vm136_vm0, 4294967295, %v1174_v10  ;;  %v1067_v12 = vld [vmem:[%s1498_s2 + $0x4c] ss:$16 sps:$4 sm:$0xff]   ;;  %v1069_v13 = vld [vmem:[%s1498_s2 + $0x40] ss:$16 sps:$4 sm:$0xff]   ;;  %vm132_vm2 = vcmask 613376  }
   0x5   :  { %195 = vmatprep.subr.bf16.mxu1 %v1061_v6  ;;  %v1070_v14 = vld [vmem:[%s1498_s2 + $0x48] ss:$16 sps:$4 sm:$0xff]   ;;  %v1071_v15 = vld [vmem:[%s1498_s2 + $0x64] ss:$16 sps:$4 sm:$0xff]   ;;  %v1073_v16 = vld [vmem:[%s1498_s2 + $0x6c] ss:$16 sps:$4 sm:$0xff]  }
   0x6   :  { %v1075_v17 = vld [vmem:[%s1498_s2 + $0x60] ss:$16 sps:$4 sm:$0xff]   ;;  %v1076_v18 = vld [vmem:[%s1498_s2 + $0x68] ss:$16 sps:$4 sm:$0xff]   ;;  %v1246_v19 = vsel %vm137_vm1, %v138_v11, 0  ;;  %vm896_vm3 = vcmask 62464  }
   0x7   :  { %155 = vmatpush1.bf16.msra.mxu0 %v1063_v7  ;;  %v1077_v20 = vld [vmem:[%s1498_s2 + $0x84] ss:$16 sps:$4 sm:$0x3f]   ;;  %v1079_v21 = vld [vmem:[%s1498_s2 + $0x8c] ss:$16 sps:$4 sm:$0x3f]  }
   0x8   :  { %196 = vmatpush1.bf16.msra.mxu1 %v1064_v8  ;;  %156 = vmatprep.subr.bf16.mxu0 %v1065_v9  ;;  %v144_v22 = vand.u32 %v1077_v20, %v1246_v19  ;;  %v1081_v23 = vld [vmem:[%s1498_s2 + $0x80] ss:$16 sps:$4 sm:$0x3f]   ;;  %v1082_v24 = vld [vmem:[%s1498_s2 + $0x88] ss:$16 sps:$4 sm:$0x3f]   ;;  %v150_v25 = vand.u32 %v1079_v21, %v1246_v19 }
   0x9   :  { %197 = vmatprep.subr.bf16.mxu1 %v1067_v12  ;;  %v141_v26 = vand.u32 %v1081_v23, %v1246_v19  ;;  %v147_v27 = vand.u32 %v1082_v24, %v1246_v19  ;;  %v1085_v28 = vld [vmem:[%s1498_s2 + $0xa4] ss:$16 sps:$4 sm:$0xff]   ;;  %v1088_v29 = vld [vmem:[%s1498_s2 + $0xac] ss:$16 sps:$4 sm:$0xff]   ;;  %v1273_v30 = vld [vmem:[%s1499_s0] sm:$0x7] }
   0xa   :  { %v1083_v31 = vld [vmem:[%s1498_s2 + $0xa0] ss:$16 sps:$4 sm:$0xff]   ;;  %v1086_v32 = vld [vmem:[%s1498_s2 + $0xa8] ss:$16 sps:$4 sm:$0xff]   ;;  %v1091_v33 = vld [vmem:[%s1498_s2 + $0xc4] ss:$16 sps:$4 sm:$0xff]  }
   0xb   :  { %157 = vmatpush1.bf16.msra.mxu0 %v1069_v13  ;;  %v1094_v34 = vld [vmem:[%s1498_s2 + $0xcc] ss:$16 sps:$4 sm:$0xff]   ;;  %v1089_v35 = vld [vmem:[%s1498_s2 + $0xc0] ss:$16 sps:$4 sm:$0xff]   ;;  %v1092_v36 = vld [vmem:[%s1498_s2 + $0xc8] ss:$16 sps:$4 sm:$0xff]  }
   0xc   :  { %198 = vmatpush1.bf16.msra.mxu1 %v1070_v14  ;;  %158 = vmatprep.subr.bf16.mxu0 %v1071_v15  ;;  %v1097_v37 = vld [vmem:[%s1498_s2 + $0xe4] ss:$16 sps:$4 sm:$0xff]   ;;  %v1100_v38 = vld [vmem:[%s1498_s2 + $0xec] ss:$16 sps:$4 sm:$0xff]   ;;  %v1095_v39 = vld [vmem:[%s1498_s2 + $0xe0] ss:$16 sps:$4 sm:$0xff]  }
   0xd   :  { %199 = vmatprep.subr.bf16.mxu1 %v1073_v16  ;;  %v1098_v40 = vld [vmem:[%s1498_s2 + $0xe8] ss:$16 sps:$4 sm:$0xff]   ;;  %v1103_v41 = vld [vmem:[%s1498_s2 + $0x104] ss:$16 sps:$4 sm:$0xff]   ;;  %v1106_v42 = vld [vmem:[%s1498_s2 + $0x10c] ss:$16 sps:$4 sm:$0xff]  }
   0xe   :  { %v1109_v43 = vld [vmem:[%s1498_s2 + $0x124] ss:$16 sps:$4 sm:$0x3f]   ;;  %v1112_v44 = vld [vmem:[%s1498_s2 + $0x12c] ss:$16 sps:$4 sm:$0x3f]  }
   0xf   :  { %159 = vmatpush1.bf16.msra.mxu0 %v1075_v17  ;;  %v1101_v45 = vld [vmem:[%s1498_s2 + $0x100] ss:$16 sps:$4 sm:$0xff]   ;;  %v1104_v47 = vld [vmem:[%s1498_s2 + $0x108] ss:$16 sps:$4 sm:$0xff]   ;;  %v355_v49 = vand.u32 %v1109_v43, %v1246_v19  ;;  %v361_v50 = vand.u32 %v1112_v44, %v1246_v19  ;;  %v1115_v53 = vld [vmem:[%s1498_s2 + $0x144] ss:$16 sps:$4 sm:$0xff]  }
  0x10   :  { %200 = vmatpush1.bf16.msra.mxu1 %v1076_v18  ;;  %160 = vmatprep.subr.bf16.mxu0 %v144_v22  ;;  %v1107_v46 = vld [vmem:[%s1498_s2 + $0x120] ss:$16 sps:$4 sm:$0x3f]   ;;  %v1110_v48 = vld [vmem:[%s1498_s2 + $0x128] ss:$16 sps:$4 sm:$0x3f]  }
  0x11   :  { %201 = vmatprep.subr.bf16.mxu1 %v150_v25  ;;  %v352_v51 = vand.u32 %v1107_v46, %v1246_v19  ;;  %v358_v52 = vand.u32 %v1110_v48, %v1246_v19  ;;  %v1118_v54 = vld [vmem:[%s1498_s2 + $0x14c] ss:$16 sps:$4 sm:$0xff]   ;;  %v1113_v55 = vld [vmem:[%s1498_s2 + $0x140] ss:$16 sps:$4 sm:$0xff]   ;;  %v1116_v56 = vld [vmem:[%s1498_s2 + $0x148] ss:$16 sps:$4 sm:$0xff]  }
  0x12   :  { %v1121_v57 = vld [vmem:[%s1498_s2 + $0x164] ss:$16 sps:$4 sm:$0xff]   ;;  %v1124_v58 = vld [vmem:[%s1498_s2 + $0x16c] ss:$16 sps:$4 sm:$0xff]   ;;  %v1119_v59 = vld [vmem:[%s1498_s2 + $0x160] ss:$16 sps:$4 sm:$0xff]  }
  0x13   :  { %161 = vmatpush1.bf16.msra.mxu0 %v141_v26  ;;  %v1122_v60 = vld [vmem:[%s1498_s2 + $0x168] ss:$16 sps:$4 sm:$0xff]   ;;  %v1127_v61 = vld [vmem:[%s1498_s2 + $0x184] ss:$16 sps:$4 sm:$0xff]   ;;  %v1130_v62 = vld [vmem:[%s1498_s2 + $0x18c] ss:$16 sps:$4 sm:$0xff]  }
  0x14   :  { %202 = vmatpush1.bf16.msra.mxu1 %v147_v27  ;;  %363 = vmatprep.subr.bf16.mxu0 %v1085_v28  ;;  %v1125_v63 = vld [vmem:[%s1498_s2 + $0x180] ss:$16 sps:$4 sm:$0xff]   ;;  %v1128_v0 = vld [vmem:[%s1498_s2 + $0x188] ss:$16 sps:$4 sm:$0xff]   ;;  %v1133_v2 = vld [vmem:[%s1498_s2 + $0x1a4] ss:$16 sps:$4 sm:$0xff]  }
  0x15   :  { %404 = vmatprep.subr.bf16.mxu1 %v1088_v29  ;;  %v1136_v3 = vld [vmem:[%s1498_s2 + $0x1ac] ss:$16 sps:$4 sm:$0xff]   ;;  %v1139_v4 = vld [vmem:[%s1498_s2 + $0x1c4] ss:$16 sps:$4 sm:$0x3f]  }
  0x16   :  { %922 = vmatmul.mubr.msk.bf16.vlgmr.msra.gmra.mrb[0].mxu0 %vm132_vm2, %v1273_v30  ;;  %v1142_v5 = vld [vmem:[%s1498_s2 + $0x1cc] ss:$16 sps:$4 sm:$0x3f]   ;;  %v1131_v6 = vld [vmem:[%s1498_s2 + $0x1a0] ss:$16 sps:$4 sm:$0xff]   ;;  %v570_v10 = vand.u32 %v1139_v4, %v1246_v19 }
  0x17   :  { %923 = vmatmul.mubr.msk.bf16.vlgmr.msra.gmra.mrb[0].mxu1 %vm132_vm2, %v1273_v30  ;;  %364 = vmatpush1.bf16.msra.mxu0 %v1083_v31  ;;  %v1134_v7 = vld [vmem:[%s1498_s2 + $0x1a8] ss:$16 sps:$4 sm:$0xff]   ;;  %v1137_v8 = vld [vmem:[%s1498_s2 + $0x1c0] ss:$16 sps:$4 sm:$0x3f]   ;;  %v576_v11 = vand.u32 %v1142_v5, %v1246_v19 }
  0x18   :  { %405 = vmatpush1.bf16.msra.mxu1 %v1086_v32  ;;  %365 = vmatprep.subr.bf16.mxu0 %v1091_v33  ;;  %v1140_v9 = vld [vmem:[%s1498_s2 + $0x1c8] ss:$16 sps:$4 sm:$0x3f]   ;;  %v879_v12 = vld [vmem:[%s1500_s1] sm:$0x3f]  ;;  %v567_v13 = vand.u32 %v1137_v8, %v1246_v19 }
  0x19   :  { %406 = vmatprep.subr.bf16.mxu1 %v1094_v34  ;;  %395 = vmatprep.mubr.bf16.mxu0 %v1173_v1  ;;  %v573_v14 = vand.u32 %v1140_v9, %v1246_v19  ;;  %v1145_v15 = vld [vmem:[%s1498_s2 + $0x1e4] ss:$16 sps:$4 sm:$0xff]   ;;  %v1148_v16 = vld [vmem:[%s1498_s2 + $0x1ec] ss:$16 sps:$4 sm:$0xff]   ;;  %v1143_v17 = vld [vmem:[%s1498_s2 + $0x1e0] ss:$16 sps:$4 sm:$0xff]  }
  0x1a   :  { %436 = vmatprep.mubr.bf16.mxu1 %v1173_v1  ;;  %882 = vperm.xlu0 %1052, %v879_v12   ;;  %v1146_v18 = vld [vmem:[%s1498_s2 + $0x1e8] ss:$16 sps:$4 sm:$0xff]   ;;  %v1151_v20 = vld [vmem:[%s1498_s2 + $0x204] ss:$16 sps:$4 sm:$0xff]   ;;  %v1154_v21 = vld [vmem:[%s1498_s2 + $0x20c] ss:$16 sps:$4 sm:$0xff]  }
  0x1b   :  { %366 = vmatpush1.bf16.msra.mxu0 %v1089_v35  ;;  %v1149_v22 = vld [vmem:[%s1498_s2 + $0x200] ss:$16 sps:$4 sm:$0xff]   ;;  %v1152_v23 = vld [vmem:[%s1498_s2 + $0x208] ss:$16 sps:$4 sm:$0xff]   ;;  %v1157_v24 = vld [vmem:[%s1498_s2 + $0x224] ss:$16 sps:$4 sm:$0xff]  }
  0x1c   :  { %407 = vmatpush1.bf16.msra.mxu1 %v1092_v36  ;;  %367 = vmatprep.subr.bf16.mxu0 %v1097_v37  ;;  %v1160_v25 = vld [vmem:[%s1498_s2 + $0x22c] ss:$16 sps:$4 sm:$0xff]   ;;  %v1155_v26 = vld [vmem:[%s1498_s2 + $0x220] ss:$16 sps:$4 sm:$0xff]   ;;  %v1158_v27 = vld [vmem:[%s1498_s2 + $0x228] ss:$16 sps:$4 sm:$0xff]  }
  0x1d   :  { %408 = vmatprep.subr.bf16.mxu1 %v1100_v38  ;;  %v1163_v28 = vld [vmem:[%s1498_s2 + $0x244] ss:$16 sps:$4 sm:$0xff]   ;;  %v1166_v29 = vld [vmem:[%s1498_s2 + $0x24c] ss:$16 sps:$4 sm:$0xff]   ;;  %v1161_v32 = vld [vmem:[%s1498_s2 + $0x240] ss:$16 sps:$4 sm:$0xff]  }
  0x1e   :  { %v1172_v31 = vld [vmem:[%s1498_s2 + $0x26c] ss:$16 sps:$4 sm:$0x3f]   ;;  %v1164_v33 = vld [vmem:[%s1498_s2 + $0x248] ss:$16 sps:$4 sm:$0xff]  }
  0x1f   :  { %368 = vmatpush1.bf16.msra.mxu0 %v1095_v39  ;;  %v1167_v34 = vld [vmem:[%s1498_s2 + $0x260] ss:$16 sps:$4 sm:$0x3f]   ;;  %v1170_v35 = vld [vmem:[%s1498_s2 + $0x268] ss:$16 sps:$4 sm:$0x3f]   ;;  %v791_v37 = vand.u32 %v1172_v31, %v1246_v19 }
  0x20   :  { %409 = vmatpush1.bf16.msra.mxu1 %v1098_v40  ;;  %369 = vmatprep.subr.bf16.mxu0 %v1103_v41  ;;  %v782_v38 = vand.u32 %v1167_v34, %v1246_v19  ;;  %v788_v39 = vand.u32 %v1170_v35, %v1246_v19 }
  0x21   :  { %410 = vmatprep.subr.bf16.mxu1 %v1106_v42 }
  0x23   :  { %370 = vmatpush1.bf16.msra.mxu0 %v1101_v45 }
  0x24   :  { %411 = vmatpush1.bf16.msra.mxu1 %v1104_v47  ;;  %371 = vmatprep.subr.bf16.mxu0 %v355_v49 }
  0x25   :  { %412 = vmatprep.subr.bf16.mxu1 %v361_v50 }
  0x27   :  { %372 = vmatpush1.bf16.msra.mxu0 %v352_v51 }
  0x28   :  { %413 = vmatpush1.bf16.msra.mxu1 %v358_v52  ;;  %578 = vmatprep.subr.bf16.mxu0 %v1115_v53 }
  0x29   :  { %619 = vmatprep.subr.bf16.mxu1 %v1118_v54 }
  0x2a   :  { %964 = vmatmul.mubr.msk.bf16.vlgmr.msra.gmra.mrb[4].mxu0 %vm132_vm2, %v1273_v30 }
  0x2b   :  { %965 = vmatmul.mubr.msk.bf16.vlgmr.msra.gmra.mrb[4].mxu1 %vm132_vm2, %v1273_v30  ;;  %579 = vmatpush1.bf16.msra.mxu0 %v1113_v55 }
  0x2c   :  { %620 = vmatpush1.bf16.msra.mxu1 %v1116_v56  ;;  %580 = vmatprep.subr.bf16.mxu0 %v1121_v57 }
  0x2d   :  { %621 = vmatprep.subr.bf16.mxu1 %v1124_v58  ;;  %610 = vmatprep.mubr.bf16.mxu0 %v1173_v1 }
  0x2e   :  { %651 = vmatprep.mubr.bf16.mxu1 %v1173_v1 }
  0x2f   :  { %581 = vmatpush1.bf16.msra.mxu0 %v1119_v59 }
  0x30   :  { %622 = vmatpush1.bf16.msra.mxu1 %v1122_v60  ;;  %582 = vmatprep.subr.bf16.mxu0 %v1127_v61 }
  0x31   :  { %623 = vmatprep.subr.bf16.mxu1 %v1130_v62 }
  0x33   :  { %583 = vmatpush1.bf16.msra.mxu0 %v1125_v63 }
  0x34   :  { %624 = vmatpush1.bf16.msra.mxu1 %v1128_v0  ;;  %584 = vmatprep.subr.bf16.mxu0 %v1133_v2 }
  0x35   :  { %625 = vmatprep.subr.bf16.mxu1 %v1136_v3 }
  0x37   :  { %585 = vmatpush1.bf16.msra.mxu0 %v1131_v6 }
  0x38   :  { %626 = vmatpush1.bf16.msra.mxu1 %v1134_v7  ;;  %586 = vmatprep.subr.bf16.mxu0 %v570_v10 }
  0x39   :  { %627 = vmatprep.subr.bf16.mxu1 %v576_v11 }
  0x3b   :  { %587 = vmatpush1.bf16.msra.mxu0 %v567_v13 }
  0x3c   :  { %628 = vmatpush1.bf16.msra.mxu1 %v573_v14  ;;  %793 = vmatprep.subr.bf16.mxu0 %v1145_v15 }
  0x3d   :  { %834 = vmatprep.subr.bf16.mxu1 %v1148_v16 }
  0x3e   :  { %1006 = vmatmul.mubr.msk.bf16.vlgmr.msra.gmra.mrb[8].mxu0 %vm132_vm2, %v1273_v30 }
  0x3f   :  { %1007 = vmatmul.mubr.msk.bf16.vlgmr.msra.gmra.mrb[8].mxu1 %vm132_vm2, %v1273_v30  ;;  %794 = vmatpush1.bf16.msra.mxu0 %v1143_v17 }
  0x40   :  { %835 = vmatpush1.bf16.msra.mxu1 %v1146_v18  ;;  %795 = vmatprep.subr.bf16.mxu0 %v1151_v20 }
  0x41   :  { %836 = vmatprep.subr.bf16.mxu1 %v1154_v21  ;;  %825 = vmatprep.mubr.bf16.mxu0 %v1173_v1 }
  0x42   :  { %866 = vmatprep.mubr.bf16.mxu1 %v1173_v1  ;;  %v1169_v1 = vld [vmem:[%s1498_s2 + $0x264] ss:$16 sps:$4 sm:$0x3f]  }
  0x43   :  { %796 = vmatpush1.bf16.msra.mxu0 %v1149_v22  ;;  %v785_v36 = vand.u32 %v1169_v1, %v1246_v19 }
  0x44   :  { %837 = vmatpush1.bf16.msra.mxu1 %v1152_v23  ;;  %797 = vmatprep.subr.bf16.mxu0 %v1157_v24 }
  0x45   :  { %838 = vmatprep.subr.bf16.mxu1 %v1160_v25 }
  0x47   :  { %798 = vmatpush1.bf16.msra.mxu0 %v1155_v26 }
  0x48   :  { %839 = vmatpush1.bf16.msra.mxu1 %v1158_v27  ;;  %799 = vmatprep.subr.bf16.mxu0 %v1163_v28 }
  0x49   :  { %840 = vmatprep.subr.bf16.mxu1 %v1166_v29 }
  0x4b   :  { %800 = vmatpush1.bf16.msra.mxu0 %v1161_v32 }
  0x4c   :  { %841 = vmatpush1.bf16.msra.mxu1 %v1164_v33  ;;  %801 = vmatprep.subr.bf16.mxu0 %v785_v36 }
  0x4d   :  { %842 = vmatprep.subr.bf16.mxu1 %v791_v37 }
  0x4f   :  { %802 = vmatpush1.bf16.msra.mxu0 %v782_v38 }
  0x50   :  { %843 = vmatpush1.bf16.msra.mxu1 %v788_v39 }
  0x52   :  { %1048 = vmatmul.mubr.msk.bf16.vlgmr.msra.gmra.mrb[12].mxu0 %vm132_vm2, %v1273_v30 }
  0x53   :  { %1049 = vmatmul.mubr.msk.bf16.vlgmr.msra.gmra.mrb[12].mxu1 %vm132_vm2, %v1273_v30 }
  0x99   :  { %v883_v7 = vpop.permute.xlu0 %882 }
  0xe9   :  { %v186_v40 = vpop.f32.mrb[0].mxu0 }
  0xea   :  { %v227_v41 = vpop.f32.mrb[0].mxu1  ;;  %v188_v42 = vpop.f32.mrb[1].mxu0 }
  0xeb   :  { %v229_v43 = vpop.f32.mrb[1].mxu1  ;;  %v190_v44 = vpop.f32.mrb[2].mxu0 }
  0xec   :  { %v231_v45 = vpop.f32.mrb[2].mxu1  ;;  %v191_v46 = vpop.f32.mrb[3].mxu0 }
  0xed   :  { %v232_v47 = vpop.f32.mrb[3].mxu1 }
  0xfd   :  { %v397_v48 = vpop.f32.mrb[4].mxu0 }
  0xfe   :  { %v438_v19 = vpop.f32.mrb[4].mxu1  ;;  %v445_v49 = vmax.f32 %v186_v40, %v397_v48  ;;  %v399_v51 = vpop.f32.mrb[5].mxu0 }
  0xff   :  { %v447_v50 = vmax.f32 %v227_v41, %v438_v19  ;;  %v440_v52 = vpop.f32.mrb[5].mxu1  ;;  %v446_v53 = vmax.f32 %v188_v42, %v399_v51  ;;  %v401_v55 = vpop.f32.mrb[6].mxu0 }
 0x100   :  { %v448_v54 = vmax.f32 %v229_v43, %v440_v52  ;;  %v442_v56 = vpop.f32.mrb[6].mxu1  ;;  %v402_v57 = vpop.f32.mrb[7].mxu0 }
 0x101   :  { %v443_v30 = vpop.f32.mrb[7].mxu1 }
 0x111   :  { %v612_v58 = vpop.f32.mrb[8].mxu0 }
 0x112   :  { %v653_v59 = vpop.f32.mrb[8].mxu1  ;;  %v660_v60 = vmax.f32 %v445_v49, %v612_v58  ;;  %v614_v62 = vpop.f32.mrb[9].mxu0 }
 0x113   :  { %v662_v61 = vmax.f32 %v447_v50, %v653_v59  ;;  %v655_v63 = vpop.f32.mrb[9].mxu1  ;;  %v661_v0 = vmax.f32 %v446_v53, %v614_v62  ;;  %v616_v3 = vpop.f32.mrb[10].mxu0 }
 0x114   :  { %v663_v2 = vmax.f32 %v448_v54, %v655_v63  ;;  %v657_v4 = vpop.f32.mrb[10].mxu1  ;;  %v617_v5 = vpop.f32.mrb[11].mxu0 }
 0x115   :  { %v658_v6 = vpop.f32.mrb[11].mxu1 }
 0x125   :  { %v827_v8 = vpop.f32.mrb[12].mxu0 }
 0x126   :  { %v868_v9 = vpop.f32.mrb[12].mxu1  ;;  %v875_v10 = vmax.f32 %v660_v60, %v827_v8  ;;  %v829_v12 = vpop.f32.mrb[13].mxu0 }
 0x127   :  { %v877_v11 = vmax.f32 %v662_v61, %v868_v9  ;;  %v870_v13 = vpop.f32.mrb[13].mxu1  ;;  %v876_v14 = vmax.f32 %v661_v0, %v829_v12  ;;  %v831_v16 = vpop.f32.mrb[14].mxu0 }
 0x128   :  { %v878_v15 = vmax.f32 %v663_v2, %v870_v13  ;;  %v872_v17 = vpop.f32.mrb[14].mxu1  ;;  %v885_v18 = vadd.f32 %v883_v7, %v875_v10  ;;  %v832_v21 = vpop.f32.mrb[15].mxu0 }
 0x129   :  { %v887_v20 = vadd.f32 %v883_v7, %v877_v11  ;;  %v873_v22 = vpop.f32.mrb[15].mxu1  ;;  %v886_v23 = vadd.f32 %v883_v7, %v876_v14 }
 0x12a   :  { %v888_v24 = vadd.f32 %v883_v7, %v878_v15  ;;  %v889_v25 = vmax.f32 %v885_v18, 0.0 }
 0x12b   :  { %v891_v26 = vmax.f32 %v887_v20, 0.0  ;;  %v890_v27 = vmax.f32 %v886_v23, 0.0 }
 0x12c   :  { %v892_v28 = vmax.f32 %v888_v24, 0.0  ;;  %893 = vst [vmem:[%s1501_s3] sm:$0x3f] %v889_v25 }
 0x12d   :  { %895 = vst [vmem:[%s1501_s3 + $0x10] sm:$0x3f] %v891_v26  ;;  %894 = vst [vmem:[%s1501_s3 + $0x8] sm:$0x3f] %v890_v27 }
 0x12e   :  { %897 = vst.msk [vmem:[%s1501_s3 + $0x18] sm:$0x3f] %vm896_vm3, %v892_v28 }

// kernel: net_forward.4
= control target key start
LH: loop header
LB: loop body
LE: loop exit
PB: predicated region body
PF: predicated region fallthrough
CT: control target
= control target key end

     0   :  { %v691_v0 = vmov 0   ;;  %vm102_vm0 = vcmask 179200   ;;  %vm106_vm1 = vcmask 1042432   ;;  %vm536_vm2 = vcmask 408576   ;;  %s905_s2 = inlined_call_operand.vmem [shape: bf16[4,150,50], index: 2, kind: input, shape index: {}]   ;;  %s906_s0 = inlined_call_operand.vmem [shape: bf16[16,150], index: 0, kind: input, shape index: {}]   ;;  %s907_s1 = inlined_call_operand.vmem [shape: f32[16,1], index: 1, kind: input, shape index: {}]   ;;  %s908_s3 = inlined_call_operand.vmem [shape: f32[16,50], index: 3, kind: output, shape index: {}]  }
   0x1   :  { %110 = vmatprep.subr.bf16.mxu0 %v691_v0  ;;  %231 = vmatprep.subr.bf16.mxu1 %v691_v0  ;;  %v648_v1 = vld [vmem:[%s905_s2] sm:$0xff]   ;;  %v649_v2 = vld [vmem:[%s905_s2 + $0x4c] sm:$0xff]   ;;  %v651_v4 = vld [vmem:[%s905_s2 + $0x54] sm:$0xff]  }
   0x2   :  { %647 = vset.pattern.permute.xlu0 %v691_v0  ;;  %111 = vmatpush1.bf16.msra.mxu0 %v648_v1  ;;  %v650_v3 = vld [vmem:[%s905_s2 + $0x8] sm:$0xff]   ;;  %v652_v5 = vld [vmem:[%s905_s2 + $0x10] sm:$0xff]   ;;  %v653_v6 = vld [vmem:[%s905_s2 + $0x5c] sm:$0xff]  }
   0x3   :  { %232 = vmatpush1.bf16.msra.mxu1 %v649_v2  ;;  %112 = vmatprep.subr.bf16.mxu0 %v691_v0  ;;  %v654_v7 = vld [vmem:[%s905_s2 + $0x18] sm:$0xff]   ;;  %v655_v8 = vld [vmem:[%s905_s2 + $0x64] sm:$0xff]   ;;  %v657_v10 = vld [vmem:[%s905_s2 + $0x6c] sm:$0xff]  }
   0x4   :  { %233 = vmatprep.subr.bf16.mxu1 %v691_v0  ;;  %v656_v9 = vld [vmem:[%s905_s2 + $0x20] sm:$0xff]   ;;  %v658_v11 = vld [vmem:[%s905_s2 + $0x28] sm:$0xff]   ;;  %v659_v12 = vld [vmem:[%s905_s2 + $0x74] sm:$0xff]  }
   0x5   :  { %v668_v13 = vld [vmem:[%s906_s0 + $0x4] ss:$8 sps:$4 sm:$0xff]   ;;  %v660_v14 = vld [vmem:[%s905_s2 + $0x30] sm:$0xff]   ;;  %v661_v15 = vld [vmem:[%s905_s2 + $0x7c] sm:$0xff]  }
   0x6   :  { %113 = vmatpush1.bf16.msra.mxu0 %v650_v3  ;;  %555 = vmatprep.mubr.msk.bf16.mxu0 %vm102_vm0, %v668_v13  ;;  %v662_v16 = vld [vmem:[%s905_s2 + $0x38] sm:$0xff]   ;;  %v663_v17 = vld [vmem:[%s905_s2 + $0x84] sm:$0xff]   ;;  %v667_v20 = vld [vmem:[%s905_s2 + $0x94] ss:$0 sps:$4 sm:$0x77]  }
   0x7   :  { %234 = vmatpush1.bf16.msra.mxu1 %v651_v4  ;;  %114 = vmatprep.subr.bf16.mxu0 %v691_v0  ;;  %v666_v18 = vld [vmem:[%s905_s2 + $0x48] ss:$0 sps:$4 sm:$0x77]   ;;  %v664_v19 = vld [vmem:[%s905_s2 + $0x40] sm:$0xff]   ;;  %v665_v21 = vld [vmem:[%s905_s2 + $0x8c] sm:$0xff]   ;;  %v229_v23 = vsel %vm106_vm1, %v667_v20, 0 }
   0x8   :  { %235 = vmatprep.subr.bf16.mxu1 %v691_v0  ;;  %585 = vmatprep.mubr.msk.bf16.mxu1 %vm102_vm0, %v668_v13  ;;  %v108_v22 = vsel %vm106_vm1, %v666_v18, 0  ;;  %v803_v24 = vld [vmem:[%s906_s0] ss:$8 sps:$4 sm:$0xff]   ;;  %v671_v25 = vld [vmem:[%s905_s2 + $0x98] sm:$0xff]   ;;  %v674_v30 = vld [vmem:[%s905_s2 + $0xec] sm:$0xff]  }
   0x9   :  { %v672_v26 = vld [vmem:[%s905_s2 + $0xe4] sm:$0xff]   ;;  %v676_v32 = vld [vmem:[%s905_s2 + $0xf4] sm:$0xff]   ;;  %v678_v34 = vld [vmem:[%s905_s2 + $0xfc] sm:$0xff]  }
   0xa   :  { %115 = vmatpush1.bf16.msra.mxu0 %v652_v5  ;;  %v520_v27 = vld [vmem:[%s907_s1] sm:$0xff]  ;;  %v521_v29 = vld [vmem:[%s907_s1 + $0x8] sm:$0xff]  ;;  %v677_v33 = vld [vmem:[%s905_s2 + $0xb0] sm:$0xff]  }
   0xb   :  { %236 = vmatpush1.bf16.msra.mxu1 %v653_v6  ;;  %116 = vmatprep.subr.bf16.mxu0 %v691_v0  ;;  %v673_v28 = vld [vmem:[%s905_s2 + $0xa0] sm:$0xff]   ;;  %v675_v31 = vld [vmem:[%s905_s2 + $0xa8] sm:$0xff]   ;;  %v679_v35 = vld [vmem:[%s905_s2 + $0xb8] sm:$0xff]  }
   0xc   :  { %237 = vmatprep.subr.bf16.mxu1 %v691_v0  ;;  %524 = vperm.xlu0 %647, %v520_v27   ;;  %v680_v36 = vld [vmem:[%s905_s2 + $0x104] sm:$0xff]   ;;  %v682_v38 = vld [vmem:[%s905_s2 + $0x10c] sm:$0xff]   ;;  %v684_v40 = vld [vmem:[%s905_s2 + $0x114] sm:$0xff]  }
   0xd   :  { %v681_v37 = vld [vmem:[%s905_s2 + $0xc0] sm:$0xff]   ;;  %v683_v39 = vld [vmem:[%s905_s2 + $0xc8] sm:$0xff]   ;;  %v685_v41 = vld [vmem:[%s905_s2 + $0xd0] sm:$0xff]  }
   0xe   :  { %117 = vmatpush1.bf16.msra.mxu0 %v654_v7  ;;  %v686_v42 = vld [vmem:[%s905_s2 + $0x11c] sm:$0xff]   ;;  %v688_v44 = vld [vmem:[%s905_s2 + $0x124] sm:$0xff]   ;;  %v690_v46 = vld [vmem:[%s905_s2 + $0x12c] ss:$0 sps:$4 sm:$0x77]  }
   0xf   :  { %238 = vmatpush1.bf16.msra.mxu1 %v655_v8  ;;  %118 = vmatprep.subr.bf16.mxu0 %v691_v0  ;;  %v687_v43 = vld [vmem:[%s905_s2 + $0xd8] sm:$0xff]   ;;  %v689_v45 = vld [vmem:[%s905_s2 + $0xe0] ss:$0 sps:$4 sm:$0x77]   ;;  %v475_v48 = vsel %vm106_vm1, %v690_v46, 0 }
  0x10   :  { %239 = vmatprep.subr.bf16.mxu1 %v691_v0  ;;  %529 = vperm.xlu0 %647, %v521_v29   ;;  %v352_v47 = vsel %vm106_vm1, %v689_v45, 0 }
  0x12   :  { %119 = vmatpush1.bf16.msra.mxu0 %v656_v9 }
  0x13   :  { %240 = vmatpush1.bf16.msra.mxu1 %v657_v10  ;;  %120 = vmatprep.subr.bf16.mxu0 %v691_v0 }
  0x14   :  { %241 = vmatprep.subr.bf16.mxu1 %v691_v0 }
  0x16   :  { %121 = vmatpush1.bf16.msra.mxu0 %v658_v11 }
  0x17   :  { %242 = vmatpush1.bf16.msra.mxu1 %v659_v12  ;;  %122 = vmatprep.subr.bf16.mxu0 %v691_v0 }
  0x18   :  { %243 = vmatprep.subr.bf16.mxu1 %v691_v0 }
  0x1a   :  { %123 = vmatpush1.bf16.msra.mxu0 %v660_v14 }
  0x1b   :  { %244 = vmatpush1.bf16.msra.mxu1 %v661_v15  ;;  %124 = vmatprep.subr.bf16.mxu0 %v691_v0 }
  0x1c   :  { %245 = vmatprep.subr.bf16.mxu1 %v691_v0 }
  0x1e   :  { %125 = vmatpush1.bf16.msra.mxu0 %v662_v16 }
  0x1f   :  { %246 = vmatpush1.bf16.msra.mxu1 %v663_v17  ;;  %126 = vmatprep.subr.bf16.mxu0 %v691_v0 }
  0x20   :  { %247 = vmatprep.subr.bf16.mxu1 %v691_v0 }
  0x22   :  { %127 = vmatpush1.bf16.msra.mxu0 %v664_v19 }
  0x23   :  { %248 = vmatpush1.bf16.msra.mxu1 %v665_v21  ;;  %128 = vmatprep.subr.bf16.mxu0 %v691_v0 }
  0x24   :  { %249 = vmatprep.subr.bf16.mxu1 %v691_v0 }
  0x26   :  { %129 = vmatpush1.bf16.msra.mxu0 %v108_v22 }
  0x27   :  { %250 = vmatpush1.bf16.msra.mxu1 %v229_v23  ;;  %354 = vmatprep.subr.bf16.mxu0 %v691_v0 }
  0x28   :  { %477 = vmatprep.subr.bf16.mxu1 %v691_v0 }
  0x29   :  { %143 = vmatmul.mubr.bf16.vlgmr.msra.gmra.mrb[0].mxu0 %v803_v24 }
  0x2a   :  { %264 = vmatmul.mubr.bf16.vlgmr.msra.gmra.mrb[0].mxu1 %v803_v24  ;;  %355 = vmatpush1.bf16.msra.mxu0 %v671_v25 }
  0x2b   :  { %478 = vmatpush1.bf16.msra.mxu1 %v672_v26  ;;  %356 = vmatprep.subr.bf16.mxu0 %v691_v0 }
  0x2c   :  { %479 = vmatprep.subr.bf16.mxu1 %v691_v0  ;;  %615 = vmatprep.mubr.msk.bf16.mxu0 %vm102_vm0, %v668_v13 }
  0x2d   :  { %645 = vmatprep.mubr.msk.bf16.mxu1 %vm102_vm0, %v668_v13 }
  0x2e   :  { %357 = vmatpush1.bf16.msra.mxu0 %v673_v28 }
  0x2f   :  { %480 = vmatpush1.bf16.msra.mxu1 %v674_v30  ;;  %358 = vmatprep.subr.bf16.mxu0 %v691_v0 }
  0x30   :  { %481 = vmatprep.subr.bf16.mxu1 %v691_v0 }
  0x32   :  { %359 = vmatpush1.bf16.msra.mxu0 %v675_v31 }
  0x33   :  { %482 = vmatpush1.bf16.msra.mxu1 %v676_v32  ;;  %360 = vmatprep.subr.bf16.mxu0 %v691_v0 }
  0x34   :  { %483 = vmatprep.subr.bf16.mxu1 %v691_v0 }
  0x36   :  { %361 = vmatpush1.bf16.msra.mxu0 %v677_v33 }
  0x37   :  { %484 = vmatpush1.bf16.msra.mxu1 %v678_v34  ;;  %362 = vmatprep.subr.bf16.mxu0 %v691_v0 }
  0x38   :  { %485 = vmatprep.subr.bf16.mxu1 %v691_v0 }
  0x3a   :  { %363 = vmatpush1.bf16.msra.mxu0 %v679_v35 }
  0x3b   :  { %486 = vmatpush1.bf16.msra.mxu1 %v680_v36  ;;  %364 = vmatprep.subr.bf16.mxu0 %v691_v0 }
  0x3c   :  { %487 = vmatprep.subr.bf16.mxu1 %v691_v0 }
  0x3e   :  { %365 = vmatpush1.bf16.msra.mxu0 %v681_v37 }
  0x3f   :  { %488 = vmatpush1.bf16.msra.mxu1 %v682_v38  ;;  %366 = vmatprep.subr.bf16.mxu0 %v691_v0 }
  0x40   :  { %489 = vmatprep.subr.bf16.mxu1 %v691_v0 }
  0x42   :  { %367 = vmatpush1.bf16.msra.mxu0 %v683_v39 }
  0x43   :  { %490 = vmatpush1.bf16.msra.mxu1 %v684_v40  ;;  %368 = vmatprep.subr.bf16.mxu0 %v691_v0 }
  0x44   :  { %491 = vmatprep.subr.bf16.mxu1 %v691_v0 }
  0x46   :  { %369 = vmatpush1.bf16.msra.mxu0 %v685_v41 }
  0x47   :  { %492 = vmatpush1.bf16.msra.mxu1 %v686_v42  ;;  %370 = vmatprep.subr.bf16.mxu0 %v691_v0 }
  0x48   :  { %493 = vmatprep.subr.bf16.mxu1 %v691_v0 }
  0x4a   :  { %371 = vmatpush1.bf16.msra.mxu0 %v687_v43 }
  0x4b   :  { %494 = vmatpush1.bf16.msra.mxu1 %v688_v44  ;;  %372 = vmatprep.subr.bf16.mxu0 %v691_v0 }
  0x4c   :  { %495 = vmatprep.subr.bf16.mxu1 %v691_v0 }
  0x4e   :  { %373 = vmatpush1.bf16.msra.mxu0 %v352_v47 }
  0x4f   :  { %496 = vmatpush1.bf16.msra.mxu1 %v475_v48 }
  0x51   :  { %387 = vmatmul.mubr.bf16.vlgmr.msra.gmra.mrb[4].mxu0 %v803_v24 }
  0x52   :  { %510 = vmatmul.mubr.bf16.vlgmr.msra.gmra.mrb[4].mxu1 %v803_v24 }
  0x8b   :  { %v525_v59 = vpop.permute.xlu0 %524 }
  0x8f   :  { %v530_v9 = vpop.permute.xlu0 %529 }
  0xfc   :  { %v144_v49 = vpop.f32.mrb[0].mxu0 }
  0xfd   :  { %v265_v50 = vpop.f32.mrb[0].mxu1  ;;  %v146_v51 = vpop.f32.mrb[1].mxu0 }
  0xfe   :  { %v272_v52 = vmax.f32 %v144_v49, %v265_v50  ;;  %v267_v53 = vpop.f32.mrb[1].mxu1  ;;  %v147_v54 = vpop.f32.mrb[2].mxu0 }
  0xff   :  { %v268_v55 = vpop.f32.mrb[2].mxu1  ;;  %v149_v56 = vpop.f32.mrb[3].mxu0 }
 0x100   :  { %v273_v57 = vmax.f32 %v147_v54, %v268_v55  ;;  %v270_v58 = vpop.f32.mrb[3].mxu1 }
 0x124   :  { %v388_v60 = vpop.f32.mrb[4].mxu0 }
 0x125   :  { %v395_v61 = vmax.f32 %v272_v52, %v388_v60  ;;  %v511_v62 = vpop.f32.mrb[4].mxu1  ;;  %v390_v63 = vpop.f32.mrb[5].mxu0 }
 0x126   :  { %v513_v0 = vpop.f32.mrb[5].mxu1  ;;  %v391_v1 = vpop.f32.mrb[6].mxu0 }
 0x127   :  { %v518_v2 = vmax.f32 %v395_v61, %v511_v62  ;;  %v396_v3 = vmax.f32 %v273_v57, %v391_v1  ;;  %v514_v4 = vpop.f32.mrb[6].mxu1  ;;  %v393_v5 = vpop.f32.mrb[7].mxu0 }
 0x128   :  { %v516_v6 = vpop.f32.mrb[7].mxu1 }
 0x129   :  { %v532_v7 = vadd.f32 %v525_v59, %v518_v2  ;;  %v519_v8 = vmax.f32 %v396_v3, %v514_v4 }
 0x12b   :  { %v534_v10 = vmax.f32 %v532_v7, 0.0  ;;  %v533_v11 = vadd.f32 %v530_v9, %v519_v8 }
 0x12d   :  { %537 = vst.msk [vmem:[%s908_s3] sm:$0xff] %vm536_vm2, %v534_v10  ;;  %v535_v12 = vmax.f32 %v533_v11, 0.0 }
 0x12f   :  { %538 = vst.msk [vmem:[%s908_s3 + $0x8] sm:$0xff] %vm536_vm2, %v535_v12 }

// kernel: net_forward.5
= control target key start
LH: loop header
LB: loop body
LE: loop exit
PB: predicated region body
PF: predicated region fallthrough
CT: control target
= control target key end

     0   :  { %v75_v24 = vlaneseq  ;;  %v856_v25 = vmov 1966171168   ;;  %vm363_vm0 = vcmask 130048   ;;  %s1113_s0 = inlined_call_operand.vmem [shape: bf16[2,400], index: 0, kind: input, shape index: {}]   ;;  %s1114_s1 = inlined_call_operand.vmem [shape: bf16[400,256], index: 1, kind: input, shape index: {}]   ;;  %s1115_s2 = inlined_call_operand.vmem [shape: f32[1,256], index: 2, kind: input, shape index: {}]   ;;  %s1116_s3 = inlined_call_operand.vmem [shape: bf16[256,10], index: 3, kind: input, shape index: {}]   ;;  %s1117_s4 = inlined_call_operand.vmem [shape: f32[1,10], index: 4, kind: input, shape index: {}]   ;;  %s1118_s5 = inlined_call_operand.hbm [shape: f32[2,10], index: 5, kind: output, shape index: {}]  }
   0x1   :  { %v741_v0 = vld [vmem:[%s1114_s1 + $0x4] ss:$8 sps:$4 sm:$0xff]   ;;  %v743_v1 = vld [vmem:[%s1114_s1] ss:$8 sps:$4 sm:$0xff]   ;;  %v744_v2 = vld [vmem:[%s1114_s1 + $0x14] ss:$8 sps:$4 sm:$0xff]   ;;  %v95_v26 = vunpack.c.l.s4 %v856_v25 }
   0x2   :  { %367 = vmatprep.subr.bf16.mxu0 %v741_v0  ;;  %v746_v3 = vld [vmem:[%s1114_s1 + $0x10] ss:$8 sps:$4 sm:$0xff]   ;;  %v747_v4 = vld [vmem:[%s1114_s1 + $0x24] ss:$8 sps:$4 sm:$0xff]   ;;  %v749_v5 = vld [vmem:[%s1114_s1 + $0x20] ss:$8 sps:$4 sm:$0xff]  }
   0x3   :  { %368 = vmatpush1.bf16.msra.mxu0 %v743_v1  ;;  %v750_v6 = vld [vmem:[%s1114_s1 + $0x34] ss:$8 sps:$4 sm:$0xff]   ;;  %v762_v7 = vld [vmem:[%s1114_s1 + $0x104] ss:$8 sps:$4 sm:$0xff]   ;;  %v752_v8 = vld [vmem:[%s1114_s1 + $0x30] ss:$8 sps:$4 sm:$0xff]   ;;  %v96_v32 = vunpack.c.0.s8 %v95_v26 }
   0x4   :  { %369 = vmatprep.subr.bf16.mxu0 %v744_v2  ;;  %v753_v9 = vld [vmem:[%s1114_s1 + $0x44] ss:$8 sps:$4 sm:$0xff]   ;;  %v766_v10 = vld [vmem:[%s1114_s1 + $0x100] ss:$8 sps:$4 sm:$0xff]   ;;  %408 = vmatprep.subr.bf16.mxu1 %v762_v7  ;;  %v768_v11 = vld [vmem:[%s1114_s1 + $0x114] ss:$8 sps:$4 sm:$0xff]  }
   0x5   :  { %409 = vmatpush1.bf16.msra.mxu1 %v766_v10  ;;  %v755_v12 = vld [vmem:[%s1114_s1 + $0x40] ss:$8 sps:$4 sm:$0xff]   ;;  %v772_v13 = vld [vmem:[%s1114_s1 + $0x110] ss:$8 sps:$4 sm:$0xff]   ;;  %v774_v14 = vld [vmem:[%s1114_s1 + $0x124] ss:$8 sps:$4 sm:$0xff]  }
   0x6   :  { %410 = vmatprep.subr.bf16.mxu1 %v768_v11  ;;  %v756_v15 = vld [vmem:[%s1114_s1 + $0x54] ss:$8 sps:$4 sm:$0xff]   ;;  %v778_v16 = vld [vmem:[%s1114_s1 + $0x120] ss:$8 sps:$4 sm:$0xff]   ;;  %v758_v18 = vld [vmem:[%s1114_s1 + $0x50] ss:$8 sps:$4 sm:$0xff]  }
   0x7   :  { %370 = vmatpush1.bf16.msra.mxu0 %v746_v3  ;;  %v780_v17 = vld [vmem:[%s1114_s1 + $0x134] ss:$8 sps:$4 sm:$0xff]   ;;  %v759_v19 = vld [vmem:[%s1114_s1 + $0x64] ss:$8 sps:$4 sm:$0xff]   ;;  %v784_v20 = vld [vmem:[%s1114_s1 + $0x130] ss:$8 sps:$4 sm:$0xff]  }
   0x8   :  { %371 = vmatprep.subr.bf16.mxu0 %v747_v4  ;;  %v786_v21 = vld [vmem:[%s1114_s1 + $0x144] ss:$8 sps:$4 sm:$0xff]   ;;  %v761_v22 = vld [vmem:[%s1114_s1 + $0x60] ss:$8 sps:$4 sm:$0xff]   ;;  %v764_v23 = vld [vmem:[%s1114_s1 + $0x74] ss:$8 sps:$4 sm:$0xff]  }
   0x9   :  { %411 = vmatpush1.bf16.msra.mxu1 %v772_v13  ;;  %v790_v27 = vld [vmem:[%s1114_s1 + $0x140] ss:$8 sps:$4 sm:$0xff]   ;;  %v792_v28 = vld [vmem:[%s1114_s1 + $0x154] ss:$8 sps:$4 sm:$0xff]   ;;  %v767_v29 = vld [vmem:[%s1114_s1 + $0x70] ss:$8 sps:$4 sm:$0xff]  }
   0xa   :  { %412 = vmatprep.subr.bf16.mxu1 %v774_v14  ;;  %v770_v30 = vld [vmem:[%s1114_s1 + $0x84] ss:$8 sps:$4 sm:$0xff]   ;;  %v972_v31 = vshrl.u32 %v75_v24, 7  ;;  %v796_v33 = vld [vmem:[%s1114_s1 + $0x150] ss:$8 sps:$4 sm:$0xff]  }
   0xb   :  { %372 = vmatpush1.bf16.msra.mxu0 %v749_v5  ;;  %v798_v34 = vld [vmem:[%s1114_s1 + $0x164] ss:$8 sps:$4 sm:$0xff]   ;;  %v773_v35 = vld [vmem:[%s1114_s1 + $0x80] ss:$8 sps:$4 sm:$0xff]   ;;  %v776_v36 = vld [vmem:[%s1114_s1 + $0x94] ss:$8 sps:$4 sm:$0xff]  }
   0xc   :  { %373 = vmatprep.subr.bf16.mxu0 %v750_v6  ;;  %v99_v37 = vsub.s32 %v96_v32, %v972_v31  ;;  %v802_v38 = vld [vmem:[%s1114_s1 + $0x160] ss:$8 sps:$4 sm:$0xff]   ;;  %v804_v40 = vld [vmem:[%s1114_s1 + $0x174] ss:$8 sps:$4 sm:$0xff]   ;;  %v779_v42 = vld [vmem:[%s1114_s1 + $0x90] ss:$8 sps:$4 sm:$0xff]  }
   0xd   :  { %413 = vmatpush1.bf16.msra.mxu1 %v778_v16  ;;  %v644_v39 = vld.sshfl [vmem:[%s1113_s0] sm:$0x33 pattern:$0x75316420]  ;;  %v782_v43 = vld [vmem:[%s1114_s1 + $0xa4] ss:$8 sps:$4 sm:$0xff]  }
   0xe   :  { %414 = vmatprep.subr.bf16.mxu1 %v780_v17  ;;  %v93_v41 = vcombine.high %v644_v39, %v644_v39  ;;  %v808_v45 = vld [vmem:[%s1114_s1 + $0x170] ss:$8 sps:$4 sm:$0xff]   ;;  %v810_v46 = vld [vmem:[%s1114_s1 + $0x184] ss:$8 sps:$4 sm:$0xff]   ;;  %v785_v48 = vld [vmem:[%s1114_s1 + $0xa0] ss:$8 sps:$4 sm:$0xff]   ;;  %v100_v50 = vrot.slane %v644_v39, %v99_v37 }
   0xf   :  { %374 = vmatpush1.bf16.msra.mxu0 %v752_v8  ;;  %v788_v49 = vld [vmem:[%s1114_s1 + $0xb4] ss:$8 sps:$4 sm:$0xff]   ;;  %v791_v51 = vld [vmem:[%s1114_s1 + $0xb0] ss:$8 sps:$4 sm:$0xff]   ;;  %v814_v52 = vld [vmem:[%s1114_s1 + $0x180] ss:$8 sps:$4 sm:$0xff]  }
  0x10   :  { %375 = vmatprep.subr.bf16.mxu0 %v753_v9  ;;  %v107_v44 = vrot.slane %v93_v41, %v99_v37  ;;  %v794_v53 = vld [vmem:[%s1114_s1 + $0xc4] ss:$8 sps:$4 sm:$0xff]   ;;  %v108_v56 = vcombine.high %v100_v50, %v100_v50  ;;  %v797_v58 = vld [vmem:[%s1114_s1 + $0xc0] ss:$8 sps:$4 sm:$0xff]   ;;  %v800_v59 = vld [vmem:[%s1114_s1 + $0xd4] ss:$8 sps:$4 sm:$0xff]  }
  0x11   :  { %415 = vmatpush1.bf16.msra.mxu1 %v784_v20  ;;  %v816_v54 = vld [vmem:[%s1116_s3 + $0x40] sm:$0xff]   ;;  %v818_v57 = vld [vmem:[%s1116_s3 + $0x48] sm:$0xff]  }
  0x12   :  { %416 = vmatprep.subr.bf16.mxu1 %v786_v21  ;;  %v109_v47 = vcombine.high %v107_v44, %v107_v44  ;;  %399 = vmatprep.mubr.bf16.mxu0 %v107_v44  ;;  %v817_v55 = vld [vmem:[%s1116_s3] sm:$0xff]  }
  0x13   :  { %376 = vmatpush1.bf16.msra.mxu0 %v755_v12 }
  0x14   :  { %377 = vmatprep.subr.bf16.mxu0 %v756_v15  ;;  %695 = vmatprep.mubr.msk.bf16.mxu1 %vm363_vm0, %v109_v47 }
  0x15   :  { %417 = vmatpush1.bf16.msra.mxu1 %v790_v27 }
  0x16   :  { %418 = vmatprep.subr.bf16.mxu1 %v792_v28 }
  0x17   :  { %378 = vmatpush1.bf16.msra.mxu0 %v758_v18 }
  0x18   :  { %379 = vmatprep.subr.bf16.mxu0 %v759_v19 }
  0x19   :  { %419 = vmatpush1.bf16.msra.mxu1 %v796_v33 }
  0x1a   :  { %420 = vmatprep.subr.bf16.mxu1 %v798_v34 }
  0x1b   :  { %380 = vmatpush1.bf16.msra.mxu0 %v761_v22 }
  0x1c   :  { %381 = vmatprep.subr.bf16.mxu0 %v764_v23 }
  0x1d   :  { %421 = vmatpush1.bf16.msra.mxu1 %v802_v38 }
  0x1e   :  { %422 = vmatprep.subr.bf16.mxu1 %v804_v40 }
  0x1f   :  { %382 = vmatpush1.bf16.msra.mxu0 %v767_v29 }
  0x20   :  { %383 = vmatprep.subr.bf16.mxu0 %v770_v30 }
  0x21   :  { %423 = vmatpush1.bf16.msra.mxu1 %v808_v45 }
  0x22   :  { %424 = vmatprep.subr.bf16.mxu1 %v810_v46 }
  0x23   :  { %384 = vmatpush1.bf16.msra.mxu0 %v773_v35 }
  0x24   :  { %385 = vmatprep.subr.bf16.mxu0 %v776_v36 }
  0x25   :  { %425 = vmatpush1.bf16.msra.mxu1 %v814_v52 }
  0x26   :  { %713 = vmatprep.subr.bf16.mxu1 %v816_v54 }
  0x27   :  { %386 = vmatpush1.bf16.msra.mxu0 %v779_v42 }
  0x28   :  { %387 = vmatprep.subr.bf16.mxu0 %v782_v43  ;;  %441 = vmatmul.mubr.bf16.vlgmr.msra.gmra.mrb[0].mxu1 %v108_v56 }
  0x2b   :  { %388 = vmatpush1.bf16.msra.mxu0 %v785_v48 }
  0x2c   :  { %389 = vmatprep.subr.bf16.mxu0 %v788_v49 }
  0x2f   :  { %390 = vmatpush1.bf16.msra.mxu0 %v791_v51 }
  0x30   :  { %391 = vmatprep.subr.bf16.mxu0 %v794_v53 }
  0x31   :  { %10 = vsyncpa [#allocation3], 0  ;;  %714 = vmatpush3.bf16.msra.mxu1 %v817_v55  ;;  %v819_v60 = vld [vmem:[%s1116_s3 + $0x8] sm:$0xff]   ;;  %v820_v61 = vld [vmem:[%s1116_s3 + $0x50] sm:$0xff]   ;;  %v77_v18 = vsub.s32 0, %v972_v31  ;;  %v81_v20 = vsub.s32 1, %v972_v31 }
  0x32   :  { %715 = vmatprep.subr.bf16.mxu1 %v818_v57  ;;  %v803_v62 = vld [vmem:[%s1114_s1 + $0xd0] ss:$8 sps:$4 sm:$0xff]   ;;  %v806_v63 = vld [vmem:[%s1114_s1 + $0xe4] ss:$8 sps:$4 sm:$0xff]   ;;  %v809_v2 = vld [vmem:[%s1114_s1 + $0xe0] ss:$8 sps:$4 sm:$0xff]  }
  0x33   :  { %392 = vmatpush1.bf16.msra.mxu0 %v797_v58  ;;  %v821_v0 = vld [vmem:[%s1116_s3 + $0x10] sm:$0xff]   ;;  %v822_v1 = vld [vmem:[%s1116_s3 + $0x58] sm:$0xff]   ;;  %v824_v5 = vld [vmem:[%s1116_s3 + $0x60] sm:$0xff]   ;;  %s857_s25 = smov [#allocation2]   ;;  %vm628_vm1 = vcmask 74752  }
  0x34   :  { %393 = vmatprep.subr.bf16.mxu0 %v800_v59  ;;  %v812_v3 = vld [vmem:[%s1114_s1 + $0xf4] ss:$8 sps:$4 sm:$0xff]   ;;  %v815_v6 = vld [vmem:[%s1114_s1 + $0xf0] ss:$8 sps:$4 sm:$0xff]   ;;  %v825_v7 = vld [vmem:[%s1116_s3 + $0x20] sm:$0xff]   ;;  %s636_s26 = sshll.u32 %s857_s25, 4  ;;  %s637_s26 = int_to_ptr.vmem [resolvable:$true] %s636_s26 }
  0x35   :  { %716 = vmatpush3.bf16.msra.mxu1 %v819_v60  ;;  %v823_v4 = vld [vmem:[%s1116_s3 + $0x18] sm:$0xff]   ;;  %v826_v8 = vld [vmem:[%s1116_s3 + $0x68] sm:$0xff]   ;;  %v828_v10 = vld [vmem:[%s1116_s3 + $0x70] sm:$0xff]   ;;  %s832_s27 = scalar_lea.vmem %s637_s26, 32  ;;  %p837_p1 = scmp.lt.s32.totalorder %s637_s26, %s637_s26 }
  0x36   :  { %717 = vmatprep.subr.bf16.mxu1 %v820_v61  ;;  %v827_v9 = vld [vmem:[%s1116_s3 + $0x28] sm:$0xff]   ;;  %v829_v11 = vld [vmem:[%s1116_s3 + $0x30] sm:$0xff]   ;;  %v830_v12 = vld [vmem:[%s1116_s3 + $0x78] sm:$0xff]   ;;  %p833_p0 = scmp.ne.s32.totalorder %s637_s26, %s832_s27  ;;  %p838_p2 = scmp.lt.s32.totalorder %s832_s27, %s832_s27 }
  0x37   :  { %394 = vmatpush1.bf16.msra.mxu0 %v803_v62  ;;  %v831_v13 = vld [vmem:[%s1116_s3 + $0x38] sm:$0xff]   ;;  %v73_v19 = vld [vmem:[%s1115_s2] sm:$0x3] }
  0x38   :  { %395 = vmatprep.subr.bf16.mxu0 %v806_v63  ;;  %v78_v21 = vrot.slane %v73_v19, %v77_v18  ;;  %v82_v22 = vrot.slane %v73_v19, %v81_v20  ;;  %v696_v31 = vld [vmem:[%s1117_s4] ss:$0 sm:$0xff]  ;;  %p839_p3 = por %p838_p2, %p837_p1 }
  0x39   :  { %718 = vmatpush3.bf16.msra.mxu1 %v821_v0 }
  0x3a   :  { %719 = vmatprep.subr.bf16.mxu1 %v822_v1  ;;  %p840_p4 = pnand %p839_p3, %p833_p0 }
  0x3b   :  { %396 = vmatpush1.bf16.msra.mxu0 %v809_v2 }
  0x3c   :  { %397 = vmatprep.subr.bf16.mxu0 %v812_v3 }
  0x3d   :  { %720 = vmatpush3.bf16.msra.mxu1 %v823_v4 }
  0x3e   :  { %721 = vmatprep.subr.bf16.mxu1 %v824_v5 }
  0x3f   :  { %398 = vmatpush1.bf16.msra.mxu0 %v815_v6 }
  0x41   :  { %722 = vmatpush3.bf16.msra.mxu1 %v825_v7 }
  0x42   :  { %400 = vmatmul.mubr.bf16.vlgmr.msra.gmra.mrb[0].mxu0 %v100_v50  ;;  %723 = vmatprep.subr.bf16.mxu1 %v826_v8 }
  0x45   :  { %724 = vmatpush3.bf16.msra.mxu1 %v827_v9 }
  0x46   :  { %725 = vmatprep.subr.bf16.mxu1 %v828_v10 }
  0x49   :  { %726 = vmatpush3.bf16.msra.mxu1 %v829_v11 }
  0x4a   :  { %727 = vmatprep.subr.bf16.mxu1 %v830_v12 }
  0x4d   :  { %728 = vmatpush3.bf16.msra.mxu1 %v831_v13 }
  0xfb   :  { %v442_v14 = vpop.f32.mrb[0].mxu1 }
  0xfc   :  { %v444_v15 = vpop.f32.mrb[1].mxu1 }
  0xfd   :  { %v446_v16 = vpop.f32.mrb[2].mxu1 }
  0xfe   :  { %v447_v17 = vpop.f32.mrb[3].mxu1 }
 0x115   :  { %v401_v23 = vpop.f32.mrb[0].mxu0 }
 0x116   :  { %v402_v24 = vadd.f32 %v401_v23, %v78_v21  ;;  %v403_v25 = vpop.f32.mrb[1].mxu0 }
 0x117   :  { %v404_v26 = vadd.f32 %v403_v25, %v82_v22  ;;  %v405_v27 = vpop.f32.mrb[2].mxu0 }
 0x118   :  { %v443_v28 = vadd.f32 %v442_v14, %v402_v24  ;;  %v406_v29 = vpop.f32.mrb[3].mxu0 }
 0x119   :  { %v445_v30 = vadd.f32 %v444_v15, %v404_v26 }
 0x11a   :  { %v449_v32 = vmax.f32 %v443_v28, 0.0 }
 0x11b   :  { %v450_v33 = vmax.f32 %v445_v30, 0.0 }
 0x11c   :  { %v451_v35 = vpack.c.bf16 %v449_v32, %v449_v32 }
 0x11d   :  { %v452_v34 = vpack.c.bf16 %v450_v33, %v450_v33 }
 0x11f   :  { %620 = vmatprep.mubr.bf16.mxu1 %v452_v34 }
 0x120   :  { %621 = vmatmul.mubr.bf16.vlgmr.msra.gmra.mrb[4].mxu1 %v451_v35 }
 0x1f3   :  { %v729_v36 = vpop.f32.mrb[4].mxu1 }
 0x1f4   :  { %v730_v37 = vpop.f32.mrb[5].mxu1 }
 0x1f5   :  { %v731_v38 = vadd.f32 %v730_v37, %v729_v36  ;;  %v732_v39 = vpop.f32.mrb[6].mxu1 }
 0x1f6   :  { %v733_v40 = vpop.f32.mrb[7].mxu1 }
 0x1f7   :  { %v623_v41 = vadd.f32 %v731_v38, %v696_v31 }
 0x1f9   :  { %629 = vst.msk [vmem:[#allocation2] sm:$0x3] %vm628_vm1, %v623_v41 }
 0x1fa   :  { %843 = shalt.err (!%p840_p4)
}
 0x1fb   :  { %s844_s4 = scalar_lea.hbm %s1118_s5, 32 }
 0x1fc   :  { %p845_p5 = scmp.ne.s32.totalorder %s1118_s5, %s844_s4  ;;  %p848_p6 = scmp.lt.u32.totalorder %s844_s4, %s1118_s5 }
 0x1fe   :  { %p850_p7 = pnand %p848_p6, %p845_p5 }
 0x200   :  { %853 = shalt.err (!%p850_p7)
}
 0x201   :  { %639 = dma.vmem_to_hbm [thread:$0]  %s637_s26, 32, %s1118_s5, [#allocation3]  }
 0x202   :  { %854 = dma.done.wait [#allocation3], 32  }
 0x203   :  { %855 = vsyncadd [#allocation3], 4294967264 }
 0x204   :  { %643 = vsyncpa [#allocation3], 1 }

</bundles_post_ra>
